<compile_context>
chip_gen: v6e
topology: v6e:2x2x1
jax: 0.10.0
libtpu: 0.0.40
codegen_flags: <defaults>
</compile_context>

<pallas_src>
import jax
import jax.numpy as jnp
from jax.experimental import pallas as pl
from jax.experimental.pallas import tpu as pltpu


# ----------------------------- helpers --------------------------------------


def _largest_divisor_leq(n, cap):
    cap = int(max(1, min(n, cap)))
    for d in range(cap, 0, -1):
        if n % d == 0:
            return d
    return 1


def _vmem_limit_bytes(per_step_bytes):
    # Default scoped VMEM: 16 MiB (v5e) / 32 MiB (v6e, v7x).  Only raise the
    # limit when the double-buffered working set needs it; cap at 48 MiB to
    # leave headroom under v7x's 64 MiB physical VMEM.
    need = 2 * int(per_step_bytes) + (1 << 20)
    if need <= 16 * 1024 * 1024:
        return None
    return int(min(need, 48 * 1024 * 1024))


# ----------------------------- Pallas kernels -------------------------------


def _conv3x3_s2_kernel(x_ref, w_ref, b_ref, o_ref):
    # x_ref: (1, tHo, Wo, K)      im2col activation tile (K = 9 * Cin)
    # w_ref: (K, tCout)           tap-major weights, resident across (b, h)
    # b_ref: (1, tCout)
    # o_ref: (1, tHo, Wo, tCout)  channels-last output tile
    _, tho, wo, k = x_ref.shape
    tcout = o_ref.shape[-1]
    patch = x_ref[0].reshape(tho * wo, k)          # layout-preserving if Wo%8==0
    acc = jnp.dot(patch, w_ref[...], preferred_element_type=jnp.float32)
    acc = acc + b_ref[...].astype(jnp.float32)
    o_ref[0] = acc.reshape(tho, wo, tcout).astype(o_ref.dtype)


def _avgpool2x2_kernel(x_ref, o_ref):
    # x_ref: (tR, 2, Wo, 2, C) ; o_ref: (tR, Wo, C)
    x = x_ref[...].astype(jnp.float32)
    s = (x[:, 0, :, 0, :] + x[:, 0, :, 1, :]
         + x[:, 1, :, 0, :] + x[:, 1, :, 1, :])
    o_ref[...] = (s * 0.25).astype(o_ref.dtype)


# ------------------------------ Python wrappers ------------------------------


def _downsample_conv(x_nchw, weight, bias):
    """Conv2d(Cin, Cout, 3, stride=2, padding=1) on NCHW input."""
    B, Cin, H, W = x_nchw.shape
    Cout = weight.shape[0]
    Ho = (H - 1) // 2 + 1
    Wo = (W - 1) // 2 + 1
    K = 9 * Cin

    # XLA-side layout plumbing (single pad/slice fusion): NHWC, zero-pad the
    # conv halo, take the 9 stride-2 tap slabs and stack them along channels.
    x = jnp.transpose(x_nchw, (0, 2, 3, 1))
    Hp, Wp = 2 * Ho + 1, 2 * Wo + 1
    x = jnp.pad(x, ((0, 0), (1, Hp - H - 1), (1, Wp - W - 1), (0, 0)))
    taps = [x[:, kh:kh + 2 * Ho:2, kw:kw + 2 * Wo:2, :]
            for kh in range(3) for kw in range(3)]
    xcol = jnp.concatenate(taps, axis=-1)                       # (B, Ho, Wo, K)

    # PyTorch weight [Cout, Cin, kh, kw] -> tap-major (kh, kw, cin) x cout,
    # matching the im2col channel stacking order.
    w = jnp.transpose(weight, (2, 3, 1, 0)).reshape(K, Cout)
    bvec = bias.reshape(1, Cout)

    # --- tile selection ------------------------------------------------------
    itemsize = jnp.dtype(x_nchw.dtype).itemsize
    if Cout <= 256:
        tCout = Cout
    else:
        tCout = next((t for t in (256, 128) if Cout % t == 0),
                     _largest_divisor_leq(Cout, 256))
    row_cap = max(1, (256 * 128) // max(tCout, 1))        # bound f32 acc size
    tHo = _largest_divisor_leq(Ho, max(1, row_cap // max(Wo, 1)))
    while tHo > 1 and tHo * Wo * K * itemsize > 4 * 1024 * 1024:
        tHo = _largest_divisor_leq(Ho, tHo - 1)

    per_step = (tHo * Wo * K + K * tCout + tCout + tHo * Wo * tCout) * itemsize
    grid = (B, Ho // tHo, Cout // tCout)

    out = pl.pallas_call(
        _conv3x3_s2_kernel,
        out_shape=jax.ShapeDtypeStruct((B, Ho, Wo, Cout), x_nchw.dtype),
        grid_spec=pltpu.PrefetchScalarGridSpec(
            num_scalar_prefetch=0,
            grid=grid,
            in_specs=[
                pl.BlockSpec((1, tHo, Wo, K), lambda b, h, j: (b, h, 0, 0)),
                pl.BlockSpec((K, tCout), lambda b, h, j: (0, j)),
                pl.BlockSpec((1, tCout), lambda b, h, j: (0, j)),
            ],
            out_specs=pl.BlockSpec((1, tHo, Wo, tCout),
                                   lambda b, h, j: (b, h, 0, j)),
        ),
        compiler_params=pltpu.CompilerParams(
            dimension_semantics=("parallel", "parallel", "parallel"),
            vmem_limit_bytes=_vmem_limit_bytes(per_step)),
    )(xcol, w, bvec)

    return jnp.transpose(out, (0, 3, 1, 2))  # back to NCHW


def _downsample_avgpool(x_nchw):
    """AvgPool2d(kernel_size=2, stride=2) on NCHW input."""
    B, C, H, W = x_nchw.shape
    Ho, Wo = H // 2, W // 2
    # NHWC copy, crop to even extents; the 5-D view below is a contiguous
    # reshape of that copy (no 4-phase materialization / extra HBM pass).
    x = jnp.transpose(x_nchw, (0, 2, 3, 1))[:, :2 * Ho, :2 * Wo, :]
    x = x.reshape(B * Ho, 2, Wo, 2, C)

    rows = B * Ho
    itemsize = jnp.dtype(x_nchw.dtype).itemsize
    row_bytes = 4 * Wo * C * itemsize
    tR = _largest_divisor_leq(rows,
                              max(1, (2 * 1024 * 1024) // max(row_bytes, 1)))
    per_step = tR * (row_bytes + Wo * C * itemsize)

    out = pl.pallas_call(
        _avgpool2x2_kernel,
        out_shape=jax.ShapeDtypeStruct((rows, Wo, C), x_nchw.dtype),
        grid_spec=pltpu.PrefetchScalarGridSpec(
            num_scalar_prefetch=0,
            grid=(rows // tR,),
            in_specs=[pl.BlockSpec((tR, 2, Wo, 2, C),
                                   lambda i: (i, 0, 0, 0, 0))],
            out_specs=pl.BlockSpec((tR, Wo, C), lambda i: (i, 0, 0)),
        ),
        compiler_params=pltpu.CompilerParams(
            dimension_semantics=("parallel",),
            vmem_limit_bytes=_vmem_limit_bytes(per_step)),
    )(x)

    return jnp.transpose(out.reshape(B, Ho, Wo, C), (0, 3, 1, 2))


def downsample(x, *, use_conv, weight=None, bias=None, dims=2):
    """Pallas implementation of Downsample.forward (NCHW in/out)."""
    # TODO(synk): dims=1 / dims=3 average-pooling variants are not implemented
    # (the 2D UNet path uses dims=2; use_conv=True always uses Conv2d anyway).
    assert dims == 2, "only dims=2 is implemented"
    if use_conv:
        return _downsample_conv(x, weight, bias)
    return _downsample_avgpool(x)


# ------------------------------ references (JAX) -----------------------------


def conv_ref(x, w, b):
    out = jax.lax.conv_general_dilated(
        x, w, window_strides=(2, 2), padding=((1, 1), (1, 1)),
        dimension_numbers=("NCHW", "OIHW", "NCHW"))
    return out + b.reshape(1, -1, 1, 1)


def pool_ref(x):
    B, C, H, W = x.shape
    Ho, Wo = H // 2, W // 2
    xt = x[:, :, :2 * Ho, :2 * Wo].reshape(B, C, Ho, 2, Wo, 2)
    return xt.mean(axis=(3, 5))


# ----------------------------------- main ------------------------------------


if __name__ == "__main__":
    key = jax.random.PRNGKey(0)
    k1, k2, k3, k4 = jax.random.split(key, 4)

    B, C, H, W = 2, 4, 16, 16
    Cout = 8

    # --- use_conv=True path: Conv2d(C, Cout, 3, stride=2, padding=1) ---
    x = jax.random.normal(k1, (B, C, H, W), jnp.float32)
    fan_in = C * 3 * 3
    bound = 1.0 / fan_in ** 0.5
    w = jax.random.uniform(k2, (Cout, C, 3, 3), jnp.float32,
                           minval=-bound, maxval=bound)
    b = jax.random.uniform(k3, (Cout,), jnp.float32,
                           minval=-bound, maxval=bound)

    y_conv = downsample(x, use_conv=True, weight=w, bias=b)
    y_conv = jax.block_until_ready(y_conv)
    y_conv_ref = conv_ref(x, w, b)
    assert y_conv.shape == (B, Cout, H // 2, W // 2)
    assert jnp.allclose(y_conv, y_conv_ref, atol=1e-4, rtol=1e-4), \
        "conv path mismatch vs reference"

    # --- use_conv=False path: AvgPool2d(2, 2) (channels == out_channels) ---
    x2 = jax.random.normal(k4, (B, C, H, W), jnp.float32)
    y_pool = downsample(x2, use_conv=False)
    y_pool = jax.block_until_ready(y_pool)
    y_pool_ref = pool_ref(x2)
    assert y_pool.shape == (B, C, H // 2, W // 2)
    assert jnp.allclose(y_pool, y_pool_ref, atol=1e-5, rtol=1e-5), \
        "avg-pool path mismatch vs reference"

    print("KERNEL_OK")
</pallas_src>

<mosaic_0001>
module attributes {stable_mosaic.version = 11 : i64} {
  func.func @_conv3x3_s2_kernel(%arg0: i32, %arg1: i32, %arg2: i32, %arg3: memref<1x8x8x36xf32, #tpu.memory_space<vmem>>, %arg4: memref<36x8xf32, #tpu.memory_space<vmem>>, %arg5: memref<1x8xf32, #tpu.memory_space<vmem>>, %arg6: memref<1x8x8x8xf32, #tpu.memory_space<vmem>>) attributes {dimension_semantics = [#tpu.dimension_semantics<parallel>, #tpu.dimension_semantics<parallel>, #tpu.dimension_semantics<parallel>], iteration_bounds = array<i64: 2, 1, 1>, scalar_prefetch = 0 : i64, scratch_operands = 0 : i64, tpu.core_type = #tpu.core_type<tc>, window_params = [{transform_indices = @transform_0, window_bounds = array<i64: 1, 8, 8, 36>}, {transform_indices = @transform_1, window_bounds = array<i64: 36, 8>}, {transform_indices = @transform_2, window_bounds = array<i64: 1, 8>}, {transform_indices = @transform_3, window_bounds = array<i64: 1, 8, 8, 8>}]} {
    %c0 = arith.constant 0 : index
    %c0_0 = arith.constant 0 : index
    %c0_1 = arith.constant 0 : index
    %c0_2 = arith.constant 0 : index
    %0 = vector.load %arg3[%c0, %c0_0, %c0_1, %c0_2] : memref<1x8x8x36xf32, #tpu.memory_space<vmem>>, vector<1x8x8x36xf32>
    %1 = vector.shape_cast %0 : vector<1x8x8x36xf32> to vector<8x8x36xf32>
    %2 = vector.shape_cast %1 : vector<8x8x36xf32> to vector<64x36xf32>
    %c0_3 = arith.constant 0 : index
    %c0_4 = arith.constant 0 : index
    %3 = vector.load %arg4[%c0_3, %c0_4] : memref<36x8xf32, #tpu.memory_space<vmem>>, vector<36x8xf32>
    %cst = arith.constant dense<0.000000e+00> : vector<64x8xf32>
    %4 = tpu.matmul %2, %3, %cst {dimension_numbers = #tpu.dot_dimension_numbers<[1], [0], [0], [1], [0, 0, 1, 1], [], []>} : vector<64x36xf32>, vector<36x8xf32>, vector<64x8xf32> -> vector<64x8xf32>
    %c0_5 = arith.constant 0 : index
    %c0_6 = arith.constant 0 : index
    %5 = vector.load %arg5[%c0_5, %c0_6] : memref<1x8xf32, #tpu.memory_space<vmem>>, vector<1x8xf32>
    %6 = vector.broadcast %5 : vector<1x8xf32> to vector<64x8xf32>
    %7 = arith.addf %4, %6 : vector<64x8xf32>
    %8 = vector.shape_cast %7 : vector<64x8xf32> to vector<8x8x8xf32>
    %c0_7 = arith.constant 0 : index
    %c0_8 = arith.constant 0 : index
    %c0_9 = arith.constant 0 : index
    %c0_10 = arith.constant 0 : index
    %9 = vector.load %arg6[%c0_7, %c0_8, %c0_9, %c0_10] : memref<1x8x8x8xf32, #tpu.memory_space<vmem>>, vector<1x8x8x8xf32>
    %10 = vector.shape_cast %9 : vector<1x8x8x8xf32> to vector<8x8x8xf32>
    %11 = vector.shape_cast %8 : vector<8x8x8xf32> to vector<1x8x8x8xf32>
    tpu.vector_store %arg6[%c0_7, %c0_8, %c0_9, %c0_10], %11 {strides = array<i32>} : memref<1x8x8x8xf32, #tpu.memory_space<vmem>>, vector<1x8x8x8xf32>,
    return
  }
  func.func @transform_0(%arg0: i32, %arg1: i32, %arg2: i32) -> (i32, i32, i32, i32) {
    %c0_i32 = arith.constant 0 : i32
    %c0_i32_0 = arith.constant 0 : i32
    %c0_i32_1 = arith.constant 0 : i32
    return %arg0, %arg1, %c0_i32, %c0_i32_0 : i32, i32, i32, i32
  }
  func.func @transform_1(%arg0: i32, %arg1: i32, %arg2: i32) -> (i32, i32) {
    %c0_i32 = arith.constant 0 : i32
    %c0_i32_0 = arith.constant 0 : i32
    return %c0_i32, %arg2 : i32, i32
  }
  func.func @transform_2(%arg0: i32, %arg1: i32, %arg2: i32) -> (i32, i32) {
    %c0_i32 = arith.constant 0 : i32
    %c0_i32_0 = arith.constant 0 : i32
    return %c0_i32, %arg2 : i32, i32
  }
  func.func @transform_3(%arg0: i32, %arg1: i32, %arg2: i32) -> (i32, i32, i32, i32) {
    %c0_i32 = arith.constant 0 : i32
    %c0_i32_0 = arith.constant 0 : i32
    return %arg0, %arg1, %c0_i32, %arg2 : i32, i32, i32, i32
  }
}

</mosaic_0001>

<bundles_post_ra>
// kernel: tpu_custom_call.1
= control target key start
LH: loop header
LB: loop body
LE: loop exit
PB: predicated region body
PF: predicated region fallthrough
CT: control target
= control target key end

     0   :  { %8 = vsyncpa [#allocation3], 0  ;;  %s1017_s0 = inlined_call_operand.hbm [shape: f32[2,8,8,36], index: 0, kind: input, shape index: {}]   ;;  %s1018_s1 = inlined_call_operand.vmem [shape: f32[36,8], index: 1, kind: input, shape index: {}]   ;;  %s1019_s2 = inlined_call_operand.vmem [shape: f32[1,8], index: 2, kind: input, shape index: {}]   ;;  %s1020_s3 = inlined_call_operand.hbm [shape: f32[2,8,8,8], index: 3, kind: output, shape index: {}]  }
   0x1   :  { %10 = vsyncpa [#allocation3 + $0x1], 0 }
   0x2   :  { %11 = vsyncpa [#allocation4], 0 }
   0x3   :  { %13 = vsyncpa [#allocation4 + $0x1], 0  ;;  %s823_s12 = smov 0   ;;  %s825_s13 = smov 0  }
   0x4   :  { %s827_s14 = smov 0   ;;  %s829_s15 = smov 0  }
   0x5   :  { %s831_s16 = smov 0   ;;  %s833_s17 = smov 0  }
   0x6 LB: > { %s547_s18 = sadd.s32 4294967295, %s795_s17   ;;  %s548_s19 = sadd.s32 4294967294, %s795_s17   ;;  %s795_s17 = sphi %s833_s17, %s19_s17   ;;  %s791_s16 = sphi %s831_s16, %s1031_s16   ;;  %s787_s15 = sphi %s829_s15, %s1030_s15   ;;  %s783_s14 = sphi %s827_s14, %s1029_s14   ;;  %s779_s13 = sphi %s825_s13, %s1028_s13   ;;  %s775_s12 = sphi %s823_s12, %s1027_s12  }
   0x7   : > { %s38_s20 = sadd.s32 1, %s791_s16  ;;  %s47_s21 = sadd.s32 1, %s783_s14 }
   0x8   : > { %p40_p0 = scmp.ge.s32.totalorder %s38_s20, 2  ;;  %p54_p1 = scmp.ne.s32.totalorder %s783_s14, %s779_s13 }
   0x9   : > { %p55_p2 = scmp.eq.s32.totalorder %s795_s17, 0  ;;  %p60_p3 = scmp.ne.s32.totalorder %s779_s13, %s775_s12 }
   0xa   : > { %s1033_s20 = smov (%p40_p0, %s38_s20), 0  ;;  %p61_p5 = scmp.eq.s32.totalorder %s547_s18, 0 }
   0xb   : > { %p864_p4 = por %p55_p2, %p54_p1  ;;  %s42_s23 = ssub.s32 %s791_s16, %s1033_s20 }
   0xc   : > { %p140_p6 = scmp.eq.s32.totalorder %s547_s18, 1  ;;  %p45_p7 = scmp.eq.s32.totalorder %s42_s23, 0 }
   0xd   : > { %p870_p8 = por %p61_p5, %p60_p3  ;;  %p146_p10 = scmp.eq.s32.totalorder %s548_s19, 1 }
   0xe   : > { %p874_p9 = por %p140_p6, %p54_p1  ;;  %p633_p13 = scmp.lt.s32.totalorder %s795_s17, 2 }
   0xf   : > { %s879_s26 = scalar_select %p45_p7, %s783_s14, %s47_s21  }
  0x10   : > { %p881_p11 = por %p146_p10, %p60_p3  ;;  %s179_s28 = sand.u32 1, %s783_s14  }
  0x11   : > { %s553_s29 = sshll.u32 %s179_s28, 6  ;;  %s574_s30 = sshll.u32 %s791_s16, 10 }
  0x12   : > { %s191_s6 = scalar_lea.hbm %s1017_s0, %s574_s30  ;;  %s183_s7 = scalar_lea.vmem [#allocation2], %s553_s29 }
  0x13   : > { %s192_s8 = sshll.u32 %s183_s7, 4  ;;  %p894_p0 = pnand %p633_p13, %p864_p4  ;;  %s193_s8 = int_to_ptr.vmem [resolvable:$true] %s192_s8 }
  0x14   : > { %p556_p1 = scmp.ge.s32.totalorder %s795_s17, 1  ;;  %s180_s10 = scalar_lea.sflag [#allocation3], %s179_s28 }
  0x15   : > { %p689_p2 = pneg %p894_p0  ;;  %s700_s11 = scalar_lea.vmem %s193_s8, 1024 }
  0x16   : > { %p701_p3 = scmp.ne.s32.totalorder %s193_s8, %s700_s11  ;;  %s797_s18 = smov [#allocation2]  }
  0x17   : > { %s705_s19 = sshll.u32 %s797_s18, 4  ;;  %s706_s19 = int_to_ptr.vmem [resolvable:$false] %s705_s19 }
  0x18   : > { %p703_p5 = pnand %p701_p3, %p689_p2  ;;  %s707_s21 = scalar_lea.vmem %s706_s19, 2048 }
  0x19   : > { %p708_p7 = scmp.lt.s32.totalorder %s193_s8, %s706_s19  ;;  %p709_p10 = scmp.lt.s32.totalorder %s707_s21, %s700_s11 }
  0x1a   : > { %p704_p6 = pneg %p703_p5 }
  0x1b   : > { %p710_p12 = por %p709_p10, %p708_p7 }
  0x1d   : > { %p711_p4 = pnand %p710_p12, %p704_p6 }
  0x1f   : > { %714 = shalt.err (!%p711_p4)
}
  0x20   : > { %s798_s22 = smov 128   ;;  %s799_s23 = smov 8  }
  0x21   : > { %628 = dma.hbm_to_vmem [thread:$0]  (!%p894_p0), %s191_s6, 1024, %s193_s8, %s180_s10, %s798_s22, %s798_s22, %s799_s23  }
  0x22   : > { %p200_p13 = scmp.lt.s32.totalorder %s795_s17, 3 }
  0x24   : > { %p201_p2 = pnand %p556_p1, %p200_p13 }
  0x25   : > { %s907_s28 = sand.u32 (!%p201_p2), 1, %s779_s13  }
  0x26   : > { %204 = sbr.rel (%p201_p2) target bundleno = 271 (0x10f), region = 32  ;;  %s557_s29 = sshll.u32 (!%p201_p2), %s907_s28, 6 }
  0x27   : > { %s207_s30 = scalar_lea.sflag (!%p201_p2), [#allocation3], %s907_s28  ;;  %s913_s4 = scalar_lea.vmem (!%p201_p2), [#allocation2], %s557_s29 }
  0x2b   : > { %766 = dma.done.wait (%p870_p8), %s207_s30, 1024  }
  0x2c   : > { %768 = vsyncadd (%p870_p8), %s207_s30, 4294966272  ;;  %vm294_vm0 = vcmask 1043456   ;;  %v261_v0 = vld [vmem:[%s1018_s1 + $0x20] sm:$0xf]  ;;  %v260_v1 = vld [vmem:[%s1018_s1 + $0x18] sm:$0xff]  ;;  %vm269_vm1 = vcmask 293888  }
  0x2d   : > { %589 = vmatprep.subr.msk.mxu0 %vm294_vm0, %v261_v0  ;;  %611 = vmatprep.subr.msk.mxu1 %vm294_vm0, %v261_v0  ;;  %v259_v2 = vld [vmem:[%s1018_s1 + $0x10] sm:$0xff]  ;;  %v258_v3 = vld [vmem:[%s1018_s1 + $0x8] sm:$0xff]  ;;  %v257_v4 = vld [vmem:[%s1018_s1] sm:$0xff]  ;;  %vm403_vm2 = vcmask 64512   ;;  %s239_s23 = scalar_lea.vmem [#allocation5], %s557_s29  ;;  %s575_s30 = sshll.u32 %s787_s15, 10 }
  0x2e   : > { %590 = vmatpush3.msk.msra.mxu0 %vm294_vm0, %v261_v0  ;;  %616 = vmatpush3.msk.msra.mxu1 %vm294_vm0, %v261_v0  ;;  %v249_v5 = vld [vmem:[%s913_s4] sm:$0xff]  ;;  %v250_v7 = vld [vmem:[%s913_s4 + $0x8] sm:$0xff]  ;;  %v251_v9 = vld [vmem:[%s913_s4 + $0x10] sm:$0xff]  ;;  %s963_s6 = scalar_lea.hbm %s1020_s3, %s575_s30  ;;  %s413_s15 = scalar_lea.sflag [#allocation4], %s907_s28 }
  0x2f   : > { %591 = vmatprep.subr.mxu0 %v260_v1  ;;  %612 = vmatprep.subr.mxu1 %v260_v1  ;;  %v253_v6 = vld [vmem:[%s913_s4 + $0x20] sm:$0xff]  ;;  %v254_v8 = vld [vmem:[%s913_s4 + $0x28] sm:$0xff]  ;;  %v255_v10 = vld [vmem:[%s913_s4 + $0x30] sm:$0xff]  ;;  %s800_s8 = smov [#allocation5]  }
  0x30   : > { %592 = vmatpush3.msra.mxu0 %v260_v1  ;;  %617 = vmatpush3.msra.mxu1 %v260_v1  ;;  %v252_v11 = vld [vmem:[%s913_s4 + $0x18] sm:$0xff]  ;;  %v559_v13 = vld [vmem:[%s1019_s2] ss:$0 sm:$0xff]  ;;  %s719_s9 = sshll.u32 %s800_s8, 4  ;;  %s720_s9 = int_to_ptr.vmem [resolvable:$false] %s719_s9 }
  0x31   : > { %593 = vmatprep.subr.mxu0 %v259_v2  ;;  %613 = vmatprep.subr.mxu1 %v259_v2  ;;  %v256_v12 = vld [vmem:[%s913_s4 + $0x38] sm:$0xff]  ;;  %s429_s4 = sshll.u32 %s239_s23, 4  ;;  %s721_s10 = scalar_lea.vmem %s720_s9, 2048  ;;  %s965_s4 = int_to_ptr.vmem [resolvable:$true] %s429_s4 }
  0x32   : > { %594 = vmatpush3.msra.mxu0 %v259_v2  ;;  %618 = vmatpush3.msra.mxu1 %v259_v2  ;;  %s715_s7 = scalar_lea.vmem %s965_s4, 1024  ;;  %p722_p1 = scmp.lt.s32.totalorder %s965_s4, %s720_s9 }
  0x33   : > { %595 = vmatprep.subr.mxu0 %v258_v3  ;;  %614 = vmatprep.subr.mxu1 %v258_v3  ;;  %p716_p8 = scmp.ne.s32.totalorder %s965_s4, %s715_s7  ;;  %p723_p3 = scmp.lt.s32.totalorder %s721_s10, %s715_s7 }
  0x34   : > { %596 = vmatpush3.msra.mxu0 %v258_v3  ;;  %619 = vmatpush3.msra.mxu1 %v258_v3 }
  0x35   : > { %597 = vmatprep.subr.mxu0 %v257_v4  ;;  %615 = vmatprep.subr.mxu1 %v257_v4  ;;  %p717_p12 = pnand %p716_p8, %p874_p9  ;;  %p724_p5 = por %p723_p3, %p722_p1 }
  0x36   : > { %598 = vmatpush3.msra.mxu0 %v257_v4  ;;  %620 = vmatpush3.msra.mxu1 %v257_v4 }
  0x37   : > { %599 = vmatprep.mubr.msk.f32.mxu0 %vm269_vm1, %v249_v5  ;;  %605 = vmatprep.mubr.msk.f32.mxu1 %vm269_vm1, %v253_v6  ;;  %p718_p0 = pneg %p717_p12 }
  0x38   : > { %600 = vmatmul.mubr.msk.f32.vlgmr.msra.gmra.mxu0 %vm269_vm1, %v250_v7  ;;  %606 = vmatmul.mubr.msk.f32.vlgmr.msra.gmra.mxu1 %vm269_vm1, %v254_v8 }
  0x39   : > { %602 = vmatprep.mubr.msk.f32.mxu0 %vm269_vm1, %v251_v9  ;;  %608 = vmatprep.mubr.msk.f32.mxu1 %vm269_vm1, %v255_v10  ;;  %p725_p6 = pnand %p724_p5, %p718_p0 }
  0x3c   : > { %603 = vmatmul.mubr.msk.f32.gmra.mxu0 %vm269_vm1, %v252_v11  ;;  %609 = vmatmul.mubr.msk.f32.gmra.mxu1 %vm269_vm1, %v256_v12 }
  0xf8   : > { %v601_v14 = vpop.f32.mrf.mxu0  ;;  %v607_v15 = vpop.f32.mrf.mxu1 }
  0xf9   : > { %v370_v16 = vadd.f32 %v601_v14, %v559_v13  ;;  %v390_v17 = vadd.f32 %v607_v15, %v559_v13 }
  0xfa   : > { %v364_v18 = vpop.f32.mrf.mxu0  ;;  %v384_v19 = vpop.f32.mrf.mxu1 }
  0xfb   : > { %405 = vst.msk [vmem:[%s239_s23 + $0x8] sm:$0xff] %vm403_vm2, %v370_v16  ;;  %409 = vst.msk [vmem:[%s239_s23 + $0x28] sm:$0xff] %vm403_vm2, %v390_v17  ;;  %v365_v20 = vadd.f32 %v559_v13, %v364_v18  ;;  %v385_v21 = vadd.f32 %v559_v13, %v384_v19 }
  0xfc   : > { %v604_v22 = vpop.f32.mrf.mxu0  ;;  %v610_v23 = vpop.f32.mrf.mxu1 }
  0xfd   : > { %404 = vst.msk [vmem:[%s239_s23] sm:$0xff] %vm403_vm2, %v365_v20  ;;  %408 = vst.msk [vmem:[%s239_s23 + $0x20] sm:$0xff] %vm403_vm2, %v385_v21  ;;  %v380_v24 = vadd.f32 %v604_v22, %v559_v13  ;;  %v400_v25 = vadd.f32 %v610_v23, %v559_v13 }
  0xfe   : > { %v374_v26 = vpop.f32.mrf.mxu0  ;;  %v394_v27 = vpop.f32.mrf.mxu1 }
  0xff   : > { %407 = vst.msk [vmem:[%s239_s23 + $0x18] sm:$0xff] %vm403_vm2, %v380_v24  ;;  %411 = vst.msk [vmem:[%s239_s23 + $0x38] sm:$0xff] %vm403_vm2, %v400_v25  ;;  %v375_v28 = vadd.f32 %v559_v13, %v374_v26  ;;  %v395_v29 = vadd.f32 %v559_v13, %v394_v27 }
 0x101   : > { %406 = vst.msk [vmem:[%s239_s23 + $0x10] sm:$0xff] %vm403_vm2, %v375_v28  ;;  %410 = vst.msk [vmem:[%s239_s23 + $0x30] sm:$0xff] %vm403_vm2, %v395_v29 }
 0x102   : > { %728 = shalt.err (!%p725_p6)
}
 0x103   : > { %s729_s24 = scalar_lea.hbm %s963_s6, 1024  ;;  %s733_s19 = scalar_lea.hbm %s1020_s3, 2048 }
 0x104   : > { %p730_p7 = scmp.ne.s32.totalorder %s963_s6, %s729_s24  ;;  %p734_p13 = scmp.lt.s32.totalorder %s963_s6, %s1020_s3 }
 0x105   : > { %p735_p2 = scmp.lt.s32.totalorder %s733_s19, %s729_s24 }
 0x106   : > { %p731_p10 = pnand %p730_p7, %p874_p9 }
 0x107   : > { %p736_p8 = por %p735_p2, %p734_p13 }
 0x108   : > { %p732_p4 = pneg %p731_p10 }
 0x10a   : > { %p737_p12 = pnand %p736_p8, %p732_p4 }
 0x10c   : > { %740 = shalt.err (!%p737_p12)
}
 0x10d   : > { %s801_s23 = smov 128   ;;  %s802_s30 = smov 8  }
 0x10e   : > { %623 = dma.vmem_to_hbm [thread:$0]  (%p874_p9), %s965_s4, 1024, %s963_s6, %s413_s15, %s801_s23, %s801_s23, %s802_s30  }
 0x10f PF: > { %s444_s29 = sand.u32 1, %s775_s12   ;;  %p1026_p0 = scmp.ge.s32.totalorder %s795_s17, 2 }
 0x110   : > { %s445_s5 = scalar_lea.sflag [#allocation4], %s444_s29 }
 0x111   : > { %p630_p1 = pnand %p1026_p0, %p881_p11 }
 0x113   : > { %p631_p3 = pneg %p630_p1 }
 0x115   : > { %770 = dma.done.wait (%p631_p3), %s445_s5, 1024  }
 0x116   : > { %772 = vsyncadd (%p631_p3), %s445_s5, 4294966272  ;;  %s19_s17 = sadd.s32 1, %s795_s17   ;;  %s1027_s12 = smov %s779_s13 }
 0x117   : > { %p16_p5 = scmp.ge.s32.totalorder %s19_s17, 4   ;;  %s1028_s13 = smov %s783_s14 }
 0x118   : > { %s1029_s14 = smov %s879_s26  ;;  %s1030_s15 = smov %s791_s16 }
 0x119   : > { %s1031_s16 = smov %s1033_s20  ;;  %18 = sbr.rel (!%p16_p5) target bundleno = 6 (0x6), region = 83 }
 0x11e   :  { %450 = vsyncpa [#allocation3], 1 }
 0x11f   :  { %452 = vsyncpa [#allocation3 + $0x1], 1 }
 0x120   :  { %453 = vsyncpa [#allocation4], 1 }
 0x121   :  { %455 = vsyncpa [#allocation4 + $0x1], 1 }

</bundles_post_ra>
